<compile_context>
chip_gen: v7x
topology: tpu7x:2x2x1
jax: 0.10.0
libtpu: 0.0.40
codegen_flags: <defaults>
</compile_context>

<pallas_src>
import jax
import jax.numpy as jnp
from jax import lax
from jax.experimental import pallas as pl
from jax.experimental.pallas import tpu as pltpu


def _quadratic_kernel(x_ref, w_ref, r_ref, o_ref):
    # x_ref: (TR, 128) f32  - interleaved batch/feature tile, dense on sublanes AND lanes
    # w_ref: (128, 128) f32 - kron(I_G, Q^T), resident (constant block index -> no re-DMA)
    # r_ref: (128, G)   f32 - group-sum / compaction matrix, resident
    # o_ref: (TR, G)    f32 - y for the G*TR batch elements of this tile
    x = x_ref[...]
    # (Q x_b)_i for every batch element / feature, still in the interleaved lane layout.
    qx = jnp.dot(x, w_ref[...], preferred_element_type=jnp.float32,
                 precision=lax.Precision.HIGHEST)
    acc = x * qx                                   # x_i * (Q x)_i : one VPU multiply / element
    # Sum the nx features of each batch element and compact 128 lanes -> G lanes on the MXU.
    o_ref[...] = jnp.dot(acc, r_ref[...], preferred_element_type=jnp.float32,
                         precision=lax.Precision.HIGHEST)


def quadratic_net(x, pars, *, tb=64 * 1024, min_pallas_batch=1024, interpret=False):
    """x: (B, nx) float32, pars: (nx*nx,) float32  ->  (B,) float32 = x^T (J - J^T) x."""
    x = jnp.asarray(x, jnp.float32)
    pars = jnp.asarray(pars, jnp.float32)
    B, nx = x.shape

    # Batch-independent skew-symmetric Q, built once outside the kernel (matches the module).
    J = pars.reshape(nx, nx) / ((nx - 1) * 2) ** 0.5          # norm='auto'
    Q = J - J.T

    # Small batches (pallas dispatch overhead dominates) or nx that does not divide the
    # 128-lane vreg cleanly: a single fused XLA einsum is the right tool.
    if B < min_pallas_batch or 128 % nx != 0:
        return jnp.einsum('bi,ij,bj->b', x, Q, x, precision=lax.Precision.HIGHEST)

    G = 128 // nx                                              # batch elements per 128-lane row

    # Pad the batch so the flat row-major buffer reshapes (zero copy when already aligned)
    # into full 128-lane rows; padded rows are zeros and are sliced away at the end.
    Bp = ((B + G - 1) // G) * G
    if Bp != B:
        x = jnp.pad(x, ((0, Bp - B), (0, 0)))
    rows = Bp // G
    x_rows = x.reshape(rows, 128)                              # batch on lanes AND sublanes

    # Resident constants: fold Q, the feature de-interleave and the per-batch reduction
    # into two small matmul operands (kept in VMEM across all grid steps).
    eye_g = jnp.eye(G, dtype=jnp.float32)
    W = jnp.kron(eye_g, Q.T)                                   # (128, 128) block-diagonal
    R = jnp.kron(eye_g, jnp.ones((nx, 1), jnp.float32))        # (128, G)   0/1 selection

    # Batch tile: round the (sweepable) request down to whole 8-row sublane groups so blocks
    # stay (8,128)-aligned; a single full-extent block when the batch fits in one tile.
    tr = (tb // G // 8) * 8                                    # rows per tile
    if tr <= 0 or tr >= rows:
        tr = rows
    grid = (pl.cdiv(rows, tr),)

    out = pl.pallas_call(
        _quadratic_kernel,
        out_shape=jax.ShapeDtypeStruct((rows, G), jnp.float32),
        grid=grid,
        in_specs=[
            pl.BlockSpec((tr, 128), lambda i: (i, 0)),         # streamed batch tiles
            pl.BlockSpec((128, 128), lambda i: (0, 0)),        # W: resident, never re-fetched
            pl.BlockSpec((128, G), lambda i: (0, 0)),          # R: resident, never re-fetched
        ],
        out_specs=pl.BlockSpec((tr, G), lambda i: (i, 0)),
        compiler_params=pltpu.CompilerParams(
            dimension_semantics=("parallel",),                 # shard batch tiles across TCs
            vmem_limit_bytes=32 * 1024 * 1024,                 # headroom for larger tb sweeps
        ),
        cost_estimate=pl.CostEstimate(
            flops=2 * rows * 128 * (128 + G) + rows * 128,
            transcendentals=0,
            bytes_accessed=4 * (rows * 128 + rows * G + 128 * 128 + 128 * G),
        ),
        interpret=interpret,
    )(x_rows, W, R)

    return out.reshape(Bp)[:B]


def _reference(x, pars):
    nx = x.shape[1]
    J = pars.reshape(nx, nx) / ((nx - 1) * 2) ** 0.5
    Q = J - J.T
    return jnp.einsum('bi,ij,bj->b', x, Q, x, precision=lax.Precision.HIGHEST)


if __name__ == "__main__":
    key = jax.random.PRNGKey(0)
    kp, kx1, kx2, kx3 = jax.random.split(key, 4)

    # Shapes consistent with the module: nx=4 state dim (pars has nx*nx = 16 entries).
    nx = 4
    pars = jax.random.normal(kp, (nx * nx,), dtype=jnp.float32)

    # x^T (J - J^T) x is identically 0 mathematically; both kernel and reference produce
    # f32 rounding noise near 0, so only *absolute* tolerances are meaningful.

    # 1) Tiny batch forced through the kernel path (exercises padding + single full block).
    B1 = 2
    x1 = jax.random.normal(kx1, (B1, nx), dtype=jnp.float32)
    y1 = quadratic_net(x1, pars, min_pallas_batch=0)
    jax.block_until_ready(y1)
    assert y1.shape == (B1,)
    assert jnp.allclose(y1, _reference(x1, pars), atol=1e-4)

    # 2) Multi-tile grid with a partial last tile (B multiple of 32 but not of the tile).
    B2 = 4192
    x2 = jax.random.normal(kx2, (B2, nx), dtype=jnp.float32)
    y2 = quadratic_net(x2, pars, tb=1024, min_pallas_batch=0)
    jax.block_until_ready(y2)
    assert y2.shape == (B2,)
    assert jnp.allclose(y2, _reference(x2, pars), atol=1e-4)

    # 3) Small-batch fallback path (bypasses pallas_call by design).
    B3 = 7
    x3 = jax.random.normal(kx3, (B3, nx), dtype=jnp.float32)
    y3 = quadratic_net(x3, pars)
    jax.block_until_ready(y3)
    assert y3.shape == (B3,)
    assert jnp.allclose(y3, _reference(x3, pars), atol=1e-4)

    print("KERNEL_OK")
</pallas_src>

<mosaic_0001>
module attributes {stable_mosaic.version = 11 : i64} {
  func.func @_quadratic_kernel(%arg0: i32, %arg1: memref<1x128xf32, #tpu.memory_space<vmem>>, %arg2: memref<128x128xf32, #tpu.memory_space<vmem>>, %arg3: memref<128x32xf32, #tpu.memory_space<vmem>>, %arg4: memref<1x32xf32, #tpu.memory_space<vmem>>) attributes {dimension_semantics = [#tpu.dimension_semantics<parallel>], iteration_bounds = array<i64: 1>, scalar_prefetch = 0 : i64, scratch_operands = 0 : i64, tpu.core_type = #tpu.core_type<tc>, window_params = [{transform_indices = @transform_0, window_bounds = array<i64: 1, 128>}, {pipeline_mode = #tpu.pipeline_mode<synchronous>, transform_indices = @transform_1, window_bounds = array<i64: 128, 128>}, {pipeline_mode = #tpu.pipeline_mode<synchronous>, transform_indices = @transform_2, window_bounds = array<i64: 128, 32>}, {transform_indices = @transform_3, window_bounds = array<i64: 1, 32>}]} {
    %c0 = arith.constant 0 : index
    %c0_0 = arith.constant 0 : index
    %0 = vector.load %arg1[%c0, %c0_0] : memref<1x128xf32, #tpu.memory_space<vmem>>, vector<1x128xf32>
    %c0_1 = arith.constant 0 : index
    %c0_2 = arith.constant 0 : index
    %1 = vector.load %arg2[%c0_1, %c0_2] : memref<128x128xf32, #tpu.memory_space<vmem>>, vector<128x128xf32>
    %cst = arith.constant dense<0.000000e+00> : vector<1x128xf32>
    %2 = tpu.matmul %0, %1, %cst {dimension_numbers = #tpu.dot_dimension_numbers<[1], [0], [0], [1], [0, 0, 1, 1], [], []>, precision = #tpu.contract_precision<fp32>} : vector<1x128xf32>, vector<128x128xf32>, vector<1x128xf32> -> vector<1x128xf32>
    %3 = arith.mulf %0, %2 : vector<1x128xf32>
    %c0_3 = arith.constant 0 : index
    %c0_4 = arith.constant 0 : index
    %4 = vector.load %arg3[%c0_3, %c0_4] : memref<128x32xf32, #tpu.memory_space<vmem>>, vector<128x32xf32>
    %cst_5 = arith.constant dense<0.000000e+00> : vector<1x32xf32>
    %5 = tpu.matmul %3, %4, %cst_5 {dimension_numbers = #tpu.dot_dimension_numbers<[1], [0], [0], [1], [0, 0, 1, 1], [], []>, precision = #tpu.contract_precision<fp32>} : vector<1x128xf32>, vector<128x32xf32>, vector<1x32xf32> -> vector<1x32xf32>
    %c0_6 = arith.constant 0 : index
    %c0_7 = arith.constant 0 : index
    %6 = vector.load %arg4[%c0_6, %c0_7] : memref<1x32xf32, #tpu.memory_space<vmem>>, vector<1x32xf32>
    tpu.vector_store %arg4[%c0_6, %c0_7], %5 {strides = array<i32>} : memref<1x32xf32, #tpu.memory_space<vmem>>, vector<1x32xf32>,
    return
  }
  func.func @transform_0(%arg0: i32) -> (i32, i32) {
    %c0_i32 = arith.constant 0 : i32
    %c0_i32_0 = arith.constant 0 : i32
    return %arg0, %c0_i32 : i32, i32
  }
  func.func @transform_1(%arg0: i32) -> (i32, i32) {
    %c0_i32 = arith.constant 0 : i32
    %c0_i32_0 = arith.constant 0 : i32
    %c0_i32_1 = arith.constant 0 : i32
    return %c0_i32, %c0_i32_0 : i32, i32
  }
  func.func @transform_2(%arg0: i32) -> (i32, i32) {
    %c0_i32 = arith.constant 0 : i32
    %c0_i32_0 = arith.constant 0 : i32
    %c0_i32_1 = arith.constant 0 : i32
    return %c0_i32, %c0_i32_0 : i32, i32
  }
  func.func @transform_3(%arg0: i32) -> (i32, i32) {
    %c0_i32 = arith.constant 0 : i32
    %c0_i32_0 = arith.constant 0 : i32
    return %arg0, %c0_i32 : i32, i32
  }
}

</mosaic_0001>

<bundles_post_ra>
// kernel: tpu_custom_call.1
= control target key start
LH: loop header
LB: loop body
LE: loop exit
PB: predicated region body
PF: predicated region fallthrough
CT: control target
= control target key end

     0   :  { %v2307_v3 = vmov 0.0|0.0   ;;  %vm2308_vm0 = vmmov 0   ;;  %v2309_v8 = vmov 0.0   ;;  %s2916_s0 = inlined_call_operand.vmem [shape: f32[1,128], index: 0, kind: input, shape index: {}]   ;;  %s2917_s1 = inlined_call_operand.vmem [shape: f32[128,128], index: 1, kind: input, shape index: {}]   ;;  %s2918_s2 = inlined_call_operand.vmem [shape: f32[128,32], index: 2, kind: input, shape index: {}]   ;;  %s2919_s3 = inlined_call_operand.hbm [shape: f32[1,32], index: 3, kind: output, shape index: {}]  }
   0x1   :  { %v16_v0 = vld [vmem:[%s2917_s1] sm:$0xff]  ;;  %v17_v1 = vld [vmem:[%s2917_s1 + $0x8] sm:$0xff]  ;;  %v18_v2 = vld [vmem:[%s2917_s1 + $0x10] sm:$0xff]  ;;  %1971 = vmatprep.subr.bf16.mxu0 %v2307_v3  ;;  %1583 = vmatprep.mubr.msk.f32.mxu0 %vm2308_vm0, %v2309_v8 }
   0x2   :  { %v33_v4 = vand.u32 4294901760, %v16_v0  ;;  %v36_v5 = vand.u32 4294901760, %v17_v1  ;;  %v19_v6 = vld [vmem:[%s2917_s1 + $0x18] sm:$0xff]  ;;  %v39_v7 = vand.u32 4294901760, %v18_v2  ;;  %v20_v10 = vld [vmem:[%s2917_s1 + $0x20] sm:$0xff]  ;;  %v21_v11 = vld [vmem:[%s2917_s1 + $0x28] sm:$0xff]  ;;  %2115 = vmatprep.subr.bf16.mxu1 %v2307_v3  ;;  %1793 = vmatprep.mubr.msk.f32.mxu1 %vm2308_vm0, %v2309_v8 }
   0x3   :  { %v42_v9 = vand.u32 4294901760, %v19_v6  ;;  %v45_v14 = vand.u32 4294901760, %v20_v10  ;;  %v48_v15 = vand.u32 4294901760, %v21_v11  ;;  %v22_v16 = vld [vmem:[%s2917_s1 + $0x30] sm:$0xff]  ;;  %v23_v17 = vld [vmem:[%s2917_s1 + $0x38] sm:$0xff] }
   0x4   :  { %v2355_v12 = vpack.c.bf16 %v36_v5, %v33_v4 }
   0x5   :  { %v2358_v13 = vpack.c.bf16 %v42_v9, %v39_v7 }
   0x6   :  { %1973 = vmatpush3.bf16.msra.mxu0 %v2355_v12 }
   0x7   :  { %1974 = vmatprep.subr.bf16.mxu0 %v2307_v3 }
   0x8   :  { %8 = vsyncpa [#allocation3], 0  ;;  %v2368_v18 = vpack.c.bf16 %v48_v15, %v45_v14  ;;  %v51_v19 = vand.u32 4294901760, %v22_v16  ;;  %v54_v20 = vand.u32 4294901760, %v23_v17  ;;  %v24_v21 = vld [vmem:[%s2917_s1 + $0x40] sm:$0xff]  ;;  %v25_v22 = vld [vmem:[%s2917_s1 + $0x48] sm:$0xff]  ;;  %v2382_v24 = vsub.f32 %v16_v0, %v33_v4 }
   0x9   :  { %v2380_v23 = vld [vmem:[%s2916_s0] sm:$0x1]  ;;  %v2384_v25 = vsub.f32 %v17_v1, %v36_v5  ;;  %v57_v27 = vand.u32 4294901760, %v24_v21  ;;  %v60_v28 = vand.u32 4294901760, %v25_v22  ;;  %v26_v29 = vld [vmem:[%s2917_s1 + $0x50] sm:$0xff]  ;;  %v27_v30 = vld [vmem:[%s2917_s1 + $0x58] sm:$0xff]  ;;  %v2402_v33 = vsub.f32 %v18_v2, %v39_v7 }
   0xa   :  { %1976 = vmatpush3.bf16.msra.mxu0 %v2358_v13  ;;  %v2387_v26 = vpack.c.bf16 %v54_v20, %v51_v19  ;;  %v2397_v31 = vand.u32 4294901760, %v2380_v23  ;;  %v28_v32 = vld [vmem:[%s2917_s1 + $0x60] sm:$0xff]  ;;  %v63_v34 = vand.u32 4294901760, %v26_v29  ;;  %v29_v35 = vld [vmem:[%s2917_s1 + $0x68] sm:$0xff]  ;;  %v30_v36 = vld [vmem:[%s2917_s1 + $0x70] sm:$0xff]  ;;  %v66_v39 = vand.u32 4294901760, %v27_v30 }
   0xb   :  { %1977 = vmatprep.subr.bf16.mxu0 %v2307_v3  ;;  %v31_v37 = vld [vmem:[%s2917_s1 + $0x78] sm:$0xff]  ;;  %v2414_v38 = vpack.c.bf16 %v60_v28, %v57_v27  ;;  %v126_v40 = vand.u32 4294901760, %v2382_v24  ;;  %v133_v41 = vand.u32 4294901760, %v2384_v25  ;;  %v2418_v42 = vsub.f32 %v19_v6, %v42_v9 }
   0xc   :  { %v2420_v43 = vsub.f32 %v20_v10, %v45_v14  ;;  %v2422_v44 = vsub.f32 %v21_v11, %v48_v15  ;;  %v2427_v45 = vsub.f32 %v2380_v23, %v2397_v31  ;;  %v69_v46 = vand.u32 4294901760, %v28_v32 }
   0xd   :  { %v72_v47 = vand.u32 4294901760, %v29_v35  ;;  %v75_v48 = vand.u32 4294901760, %v30_v36  ;;  %v78_v49 = vand.u32 4294901760, %v31_v37  ;;  %v2429_v50 = vsub.f32 %v22_v16, %v51_v19 }
   0xe   :  { %1979 = vmatpush3.bf16.msra.mxu0 %v2368_v18  ;;  %v2431_v51 = vsub.f32 %v23_v17, %v54_v20  ;;  %v2433_v52 = vsub.f32 %v24_v21, %v57_v27  ;;  %v140_v53 = vand.u32 4294901760, %v2402_v33  ;;  %v2437_v54 = vsub.f32 %v25_v22, %v60_v28 }
   0xf   :  { %1980 = vmatprep.subr.bf16.mxu0 %v2307_v3  ;;  %v2439_v55 = vpack.c.bf16 %v66_v39, %v63_v34  ;;  %v127_v56 = vsub.f32 %v2382_v24, %v126_v40  ;;  %v134_v57 = vsub.f32 %v2384_v25, %v133_v41  ;;  %v2444_v58 = vsub.f32 %v26_v29, %v63_v34 }
  0x10   :  { %v2446_v59 = vsub.f32 %v27_v30, %v66_v39  ;;  %v2448_v60 = vsub.f32 %v28_v32, %v69_v46  ;;  %v2920_v61 = vand.u32 4294901760, %v2427_v45  ;;  %v2451_v62 = vpack.c.bf16 %v72_v47, %v69_v46 }
  0x11   :  { %v2453_v63 = vsub.f32 %v29_v35, %v72_v47  ;;  %v2455_v0 = vpack.c.bf16 %v78_v49, %v75_v48  ;;  %v2457_v1 = vsub.f32 %v30_v36, %v75_v48  ;;  %v2459_v2 = vsub.f32 %v31_v37, %v78_v49 }
  0x12   :  { %1982 = vmatpush3.bf16.msra.mxu0 %v2387_v26  ;;  %v141_v4 = vsub.f32 %v2402_v33, %v140_v53  ;;  %v147_v5 = vand.u32 4294901760, %v2418_v42  ;;  %v154_v6 = vand.u32 4294901760, %v2420_v43  ;;  %v128_v7 = vand.u32 4294901760, %v127_v56 }
  0x13   :  { %1983 = vmatprep.subr.bf16.mxu0 %v2307_v3  ;;  %v135_v9 = vand.u32 4294901760, %v134_v57  ;;  %v161_v10 = vand.u32 4294901760, %v2422_v44  ;;  %v168_v11 = vand.u32 4294901760, %v2429_v50  ;;  %v116_v14 = vsub.f32 %v2427_v45, %v2920_v61 }
  0x14   :  { %v175_v15 = vand.u32 4294901760, %v2431_v51  ;;  %v182_v16 = vand.u32 4294901760, %v2433_v52  ;;  %v189_v17 = vand.u32 4294901760, %v2437_v54  ;;  %v196_v19 = vand.u32 4294901760, %v2444_v58 }
  0x15   :  { %v203_v20 = vand.u32 4294901760, %v2446_v59  ;;  %v210_v21 = vand.u32 4294901760, %v2448_v60  ;;  %v217_v22 = vand.u32 4294901760, %v2453_v63  ;;  %v224_v27 = vand.u32 4294901760, %v2457_v1 }
  0x16   :  { %1985 = vmatpush3.bf16.msra.mxu0 %v2414_v38  ;;  %v231_v28 = vand.u32 4294901760, %v2459_v2  ;;  %v2480_v29 = vpack.c.bf16 %v133_v41, %v126_v40  ;;  %v2482_v30 = vpack.c.bf16 %v147_v5, %v140_v53  ;;  %v148_v32 = vsub.f32 %v2418_v42, %v147_v5 }
  0x17   :  { %1986 = vmatprep.subr.bf16.mxu0 %v2307_v3  ;;  %v2486_v34 = vpack.c.bf16 %v161_v10, %v154_v6  ;;  %v2488_v35 = vpack.c.bf16 %v175_v15, %v168_v11  ;;  %v2490_v36 = vpack.c.bf16 %v189_v17, %v182_v16  ;;  %v2493_v37 = vpack.c.bf16 %v203_v20, %v196_v19 }
  0x18   :  { %v2495_v39 = vpack.c.bf16 %v217_v22, %v210_v21  ;;  %v2497_v40 = vpack.c.bf16 %v231_v28, %v224_v27  ;;  %v117_v41 = vand.u32 4294901760, %v116_v14  ;;  %v142_v46 = vand.u32 4294901760, %v141_v4 }
  0x19   :  { %v1996_v47 = vpack.c.bf16 %v135_v9, %v128_v7  ;;  %v149_v48 = vand.u32 4294901760, %v148_v32  ;;  %v155_v49 = vsub.f32 %v2420_v43, %v154_v6  ;;  %v162_v53 = vsub.f32 %v2422_v44, %v161_v10 }
  0x1a   :  { %1988 = vmatpush3.bf16.msra.mxu0 %v2439_v55  ;;  %v169_v56 = vsub.f32 %v2429_v50, %v168_v11  ;;  %v176_v14 = vsub.f32 %v2431_v51, %v175_v15  ;;  %v183_v4 = vsub.f32 %v2433_v52, %v182_v16  ;;  %v190_v10 = vsub.f32 %v2437_v54, %v189_v17 }
  0x1b   :  { %1989 = vmatprep.subr.bf16.mxu0 %v2307_v3  ;;  %v1999_v57 = vpack.c.bf16 %v149_v48, %v142_v46  ;;  %v156_v5 = vand.u32 4294901760, %v155_v49  ;;  %v163_v61 = vand.u32 4294901760, %v162_v53  ;;  %v197_v15 = vsub.f32 %v2444_v58, %v196_v19 }
  0x1c   :  { %v170_v7 = vand.u32 4294901760, %v169_v56  ;;  %v177_v9 = vand.u32 4294901760, %v176_v14  ;;  %v184_v11 = vand.u32 4294901760, %v183_v4  ;;  %v204_v46 = vsub.f32 %v2446_v59, %v203_v20  ;;  %v676_v4 = vld [vmem:[%s2918_s2 + $0x10] sm:$0xff] }
  0x1d   :  { %v2002_v6 = vpack.c.bf16 %v163_v61, %v156_v5  ;;  %v211_v16 = vsub.f32 %v2448_v60, %v210_v21  ;;  %v218_v17 = vsub.f32 %v2453_v63, %v217_v22  ;;  %v225_v19 = vsub.f32 %v2457_v1, %v224_v27  ;;  %v674_v27 = vld [vmem:[%s2918_s2] sm:$0xff] }
  0x1e   :  { %1991 = vmatpush3.bf16.msra.mxu0 %v2451_v62  ;;  %v2005_v32 = vpack.c.bf16 %v177_v9, %v170_v7  ;;  %v205_v48 = vand.u32 4294901760, %v204_v46  ;;  %v232_v20 = vsub.f32 %v2459_v2, %v231_v28  ;;  %v2020_v14 = vpack.c.bf16 %v2384_v25, %v2382_v24  ;;  %v675_v28 = vld [vmem:[%s2918_s2 + $0x8] sm:$0xff]  ;;  %v677_v7 = vld [vmem:[%s2918_s2 + $0x18] sm:$0xff]  ;;  %v682_v46 = vld [vmem:[%s2918_s2 + $0x40] sm:$0xff] }
  0x1f   :  { %1992 = vmatprep.subr.bf16.mxu0 %v2307_v3  ;;  %v212_v49 = vand.u32 4294901760, %v211_v16  ;;  %v219_v56 = vand.u32 4294901760, %v218_v17  ;;  %v2023_v24 = vpack.c.bf16 %v2418_v42, %v2402_v33  ;;  %v691_v25 = vand.u32 4294901760, %v674_v27  ;;  %v683_v17 = vld [vmem:[%s2918_s2 + $0x48] sm:$0xff] }
  0x20   :  { %v233_v5 = vand.u32 4294901760, %v232_v20  ;;  %v697_v9 = vand.u32 4294901760, %v676_v4  ;;  %v700_v33 = vand.u32 4294901760, %v677_v7  ;;  %vm1331_vm1 = vcmask 253952  }
  0x21   :  { %v2014_v21 = vpack.c.bf16 %v219_v56, %v212_v49  ;;  %v2026_v49 = vpack.c.bf16 %v2422_v44, %v2420_v43 }
  0x22   :  { %1994 = vmatpush3.bf16.msra.mxu0 %v2455_v0  ;;  %v2573_v56 = vsub.f32 %v677_v7, %v700_v33 }
  0x23   :  { %1995 = vmatprep.subr.bf16.mxu0 %v2307_v3 }
  0x25   :  { %1584 = vmatmul.mubr.f32.vlgmr.msra.gmra.mrb[0].mxu0 %v117_v41  ;;  %v191_v41 = vand.u32 4294901760, %v190_v10  ;;  %v678_v10 = vld [vmem:[%s2918_s2 + $0x20] sm:$0xff] }
  0x26   :  { %1997 = vmatpush3.bf16.msra.mxu0 %v1996_v47  ;;  %1618 = vmatprep.mubr.msk.f32.mxu0 %vm2308_vm0, %v2309_v8  ;;  %v198_v47 = vand.u32 4294901760, %v197_v15  ;;  %v703_v42 = vand.u32 4294901760, %v678_v10  ;;  %v681_v15 = vld [vmem:[%s2918_s2 + $0x38] sm:$0xff] }
  0x27   :  { %1998 = vmatprep.subr.bf16.mxu0 %v2307_v3  ;;  %v2008_v61 = vpack.c.bf16 %v191_v41, %v184_v11  ;;  %v679_v11 = vld [vmem:[%s2918_s2 + $0x28] sm:$0xff]  ;;  %v680_v41 = vld [vmem:[%s2918_s2 + $0x30] sm:$0xff] }
  0x28   :  { %v2011_v53 = vpack.c.bf16 %v205_v48, %v198_v47  ;;  %v2564_v48 = vsub.f32 %v676_v4, %v697_v9 }
  0x2a   :  { %2000 = vmatpush3.bf16.msra.mxu0 %v1999_v57  ;;  %v226_v57 = vand.u32 4294901760, %v225_v19  ;;  %v2575_v19 = vsub.f32 %v678_v10, %v703_v42  ;;  %v798_v10 = vand.u32 4294901760, %v2564_v48 }
  0x2b   :  { %2001 = vmatprep.subr.bf16.mxu0 %v2307_v3 }
  0x2c   :  { %v2017_v22 = vpack.c.bf16 %v233_v5, %v226_v57  ;;  %v712_v57 = vand.u32 4294901760, %v681_v15  ;;  %v715_v5 = vand.u32 4294901760, %v682_v46 }
  0x2e   :  { %2003 = vmatpush3.bf16.msra.mxu0 %v2002_v6  ;;  %v694_v6 = vand.u32 4294901760, %v675_v28  ;;  %v2584_v44 = vsub.f32 %v681_v15, %v712_v57 }
  0x2f   :  { %2004 = vmatprep.subr.bf16.mxu0 %v2307_v3 }
  0x30   :  { %v2558_v16 = vpack.c.bf16 %v694_v6, %v691_v25  ;;  %v2562_v47 = vsub.f32 %v675_v28, %v694_v6  ;;  %v2029_v28 = vpack.c.bf16 %v2431_v51, %v2429_v50  ;;  %v2035_v50 = vpack.c.bf16 %v2446_v59, %v2444_v58 }
  0x31   :  { %v2924_v58 = vand.u32 4294901760, %v2427_v45 }
  0x32   :  { %2006 = vmatpush3.bf16.msra.mxu0 %v2005_v32  ;;  %v706_v32 = vand.u32 4294901760, %v679_v11  ;;  %2117 = vmatpush3.bf16.msra.mxu1 %v2558_v16 }
  0x33   :  { %2007 = vmatprep.subr.bf16.mxu0 %v2307_v3  ;;  %2118 = vmatprep.subr.bf16.mxu1 %v2307_v3 }
  0x34   :  { %v2578_v20 = vsub.f32 %v679_v11, %v706_v32  ;;  %v2593_v4 = vpack.c.bf16 %v706_v32, %v703_v42  ;;  %v805_v11 = vand.u32 4294901760, %v2573_v56  ;;  %v799_v42 = vsub.f32 %v2564_v48, %v798_v10 }
  0x36   :  { %2009 = vmatpush3.bf16.msra.mxu0 %v2008_v61  ;;  %v2560_v61 = vsub.f32 %v674_v27, %v691_v25  ;;  %v806_v32 = vsub.f32 %v2573_v56, %v805_v11  ;;  %v800_v15 = vand.u32 4294901760, %v799_v42 }
  0x37   :  { %2010 = vmatprep.subr.bf16.mxu0 %v2307_v3 }
  0x3a   :  { %2012 = vmatpush3.bf16.msra.mxu0 %v2011_v53  ;;  %v2571_v53 = vpack.c.bf16 %v700_v33, %v697_v9 }
  0x3b   :  { %2013 = vmatprep.subr.bf16.mxu0 %v2307_v3 }
  0x3c   :  { %2120 = vmatpush3.bf16.msra.mxu1 %v2571_v53 }
  0x3d   :  { %2121 = vmatprep.subr.bf16.mxu1 %v2307_v3 }
  0x3e   :  { %2015 = vmatpush3.bf16.msra.mxu0 %v2014_v21  ;;  %v709_v21 = vand.u32 4294901760, %v680_v41 }
  0x3f   :  { %2016 = vmatprep.subr.bf16.mxu0 %v2307_v3 }
  0x40   :  { %v2582_v43 = vsub.f32 %v680_v41, %v709_v21  ;;  %2123 = vmatpush3.bf16.msra.mxu1 %v2593_v4  ;;  %v2600_v25 = vpack.c.bf16 %v712_v57, %v709_v21 }
  0x41   :  { %2124 = vmatprep.subr.bf16.mxu1 %v2307_v3 }
  0x42   :  { %2018 = vmatpush3.bf16.msra.mxu0 %v2017_v22  ;;  %v718_v22 = vand.u32 4294901760, %v683_v17 }
  0x43   :  { %2019 = vmatprep.subr.bf16.mxu0 %v2307_v3 }
  0x44   :  { %v2588_v27 = vsub.f32 %v683_v17, %v718_v22  ;;  %2126 = vmatpush3.bf16.msra.mxu1 %v2600_v25  ;;  %v2607_v51 = vpack.c.bf16 %v718_v22, %v715_v5  ;;  %v812_v17 = vand.u32 4294901760, %v2575_v19 }
  0x45   :  { %1619 = vmatmul.mubr.f32.vlgmr.msra.gmra.mrb[0].mxu0 %v2397_v31  ;;  %2127 = vmatprep.subr.bf16.mxu1 %v2307_v3 }
  0x46   :  { %2021 = vmatpush3.bf16.msra.mxu0 %v2020_v14  ;;  %1653 = vmatprep.mubr.msk.f32.mxu0 %vm2308_vm0, %v2309_v8  ;;  %v2586_v14 = vsub.f32 %v682_v46, %v715_v5  ;;  %v807_v46 = vand.u32 4294901760, %v806_v32  ;;  %v813_v57 = vsub.f32 %v2575_v19, %v812_v17 }
  0x47   :  { %2022 = vmatprep.subr.bf16.mxu0 %v2307_v3 }
  0x48   :  { %2129 = vmatpush3.bf16.msra.mxu1 %v2607_v51  ;;  %v2143_v21 = vpack.c.bf16 %v807_v46, %v800_v15  ;;  %v814_v22 = vand.u32 4294901760, %v813_v57 }
  0x49   :  { %2130 = vmatprep.subr.bf16.mxu1 %v2307_v3 }
  0x4a   :  { %2024 = vmatpush3.bf16.msra.mxu0 %v2023_v24  ;;  %v2032_v24 = vpack.c.bf16 %v2437_v54, %v2433_v52  ;;  %v2038_v52 = vpack.c.bf16 %v2453_v63, %v2448_v60  ;;  %v2041_v54 = vpack.c.bf16 %v2459_v2, %v2457_v1  ;;  %v689_v63 = vld [vmem:[%s2918_s2 + $0x78] sm:$0xff] }
  0x4b   :  { %2025 = vmatprep.subr.bf16.mxu0 %v2307_v3 }
  0x4e   :  { %2027 = vmatpush3.bf16.msra.mxu0 %v2026_v49  ;;  %v819_v49 = vand.u32 4294901760, %v2578_v20 }
  0x4f   :  { %2028 = vmatprep.subr.bf16.mxu0 %v2307_v3 }
  0x50   :  { %v820_v5 = vsub.f32 %v2578_v20, %v819_v49 }
  0x52   :  { %2030 = vmatpush3.bf16.msra.mxu0 %v2029_v28  ;;  %v821_v28 = vand.u32 4294901760, %v820_v5 }
  0x53   :  { %2031 = vmatprep.subr.bf16.mxu0 %v2307_v3 }
  0x56   :  { %2033 = vmatpush3.bf16.msra.mxu0 %v2032_v24  ;;  %v826_v24 = vand.u32 4294901760, %v2582_v43 }
  0x57   :  { %2034 = vmatprep.subr.bf16.mxu0 %v2307_v3 }
  0x5a   :  { %2036 = vmatpush3.bf16.msra.mxu0 %v2035_v50  ;;  %v833_v50 = vand.u32 4294901760, %v2584_v44 }
  0x5b   :  { %2037 = vmatprep.subr.bf16.mxu0 %v2307_v3 }
  0x5e   :  { %2039 = vmatpush3.bf16.msra.mxu0 %v2038_v52  ;;  %v2146_v52 = vpack.c.bf16 %v821_v28, %v814_v22 }
  0x5f   :  { %2040 = vmatprep.subr.bf16.mxu0 %v2307_v3 }
  0x62   :  { %2042 = vmatpush3.bf16.msra.mxu0 %v2041_v54  ;;  %v827_v54 = vsub.f32 %v2582_v43, %v826_v24 }
  0x63   :  { %2043 = vmatprep.subr.bf16.mxu0 %v2307_v3 }
  0x65   :  { %1654 = vmatmul.mubr.f32.vlgmr.msra.gmra.mrb[0].mxu0 %v2427_v45  ;;  %v686_v45 = vld [vmem:[%s2918_s2 + $0x60] sm:$0xff] }
  0x66   :  { %2045 = vmatpush3.bf16.msra.mxu0 %v2355_v12  ;;  %1688 = vmatprep.mubr.msk.f32.mxu0 %vm2308_vm0, %v2309_v8 }
  0x67   :  { %2046 = vmatprep.subr.bf16.mxu0 %v2307_v3 }
  0x6a   :  { %2048 = vmatpush3.bf16.msra.mxu0 %v2358_v13 }
  0x6b   :  { %2049 = vmatprep.subr.bf16.mxu0 %v2307_v3 }
  0x6e   :  { %2051 = vmatpush3.bf16.msra.mxu0 %v2368_v18 }
  0x6f   :  { %2052 = vmatprep.subr.bf16.mxu0 %v2307_v3 }
  0x72   :  { %2054 = vmatpush3.bf16.msra.mxu0 %v2387_v26 }
  0x73   :  { %2055 = vmatprep.subr.bf16.mxu0 %v2307_v3 }
  0x76   :  { %2057 = vmatpush3.bf16.msra.mxu0 %v2414_v38 }
  0x77   :  { %2058 = vmatprep.subr.bf16.mxu0 %v2307_v3 }
  0x7a   :  { %2060 = vmatpush3.bf16.msra.mxu0 %v2439_v55 }
  0x7b   :  { %2061 = vmatprep.subr.bf16.mxu0 %v2307_v3 }
  0x7e   :  { %2063 = vmatpush3.bf16.msra.mxu0 %v2451_v62 }
  0x7f   :  { %2064 = vmatprep.subr.bf16.mxu0 %v2307_v3 }
  0x82   :  { %2066 = vmatpush3.bf16.msra.mxu0 %v2455_v0 }
  0x83   :  { %2067 = vmatprep.subr.bf16.mxu0 %v2307_v3 }
  0x85   :  { %1689 = vmatmul.mubr.f32.vlgmr.msra.gmra.mrb[0].mxu0 %v2924_v58  ;;  %v834_v58 = vsub.f32 %v2584_v44, %v833_v50 }
  0x86   :  { %2069 = vmatpush3.bf16.msra.mxu0 %v2480_v29  ;;  %1723 = vmatprep.mubr.msk.f32.mxu0 %vm2308_vm0, %v2309_v8 }
  0x87   :  { %2070 = vmatprep.subr.bf16.mxu0 %v2307_v3 }
  0x8a   :  { %2072 = vmatpush3.bf16.msra.mxu0 %v2482_v30 }
  0x8b   :  { %2073 = vmatprep.subr.bf16.mxu0 %v2307_v3 }
  0x8e   :  { %2075 = vmatpush3.bf16.msra.mxu0 %v2486_v34  ;;  %v736_v34 = vand.u32 4294901760, %v689_v63 }
  0x8f   :  { %2076 = vmatprep.subr.bf16.mxu0 %v2307_v3 }
  0x92   :  { %2078 = vmatpush3.bf16.msra.mxu0 %v2488_v35  ;;  %v784_v35 = vand.u32 4294901760, %v2560_v61 }
  0x93   :  { %2079 = vmatprep.subr.bf16.mxu0 %v2307_v3 }
  0x94   :  { %v785_v6 = vsub.f32 %v2560_v61, %v784_v35 }
  0x96   :  { %2081 = vmatpush3.bf16.msra.mxu0 %v2490_v36  ;;  %v791_v36 = vand.u32 4294901760, %v2562_v47  ;;  %v786_v9 = vand.u32 4294901760, %v785_v6 }
  0x97   :  { %2082 = vmatprep.subr.bf16.mxu0 %v2307_v3 }
  0x98   :  { %v792_v7 = vsub.f32 %v2562_v47, %v791_v36 }
  0x9a   :  { %2084 = vmatpush3.bf16.msra.mxu0 %v2493_v37  ;;  %v793_v33 = vand.u32 4294901760, %v792_v7 }
  0x9b   :  { %2085 = vmatprep.subr.bf16.mxu0 %v2307_v3 }
  0x9c   :  { %v2140_v41 = vpack.c.bf16 %v793_v33, %v786_v9 }
  0x9e   :  { %2087 = vmatpush3.bf16.msra.mxu0 %v2495_v39 }
  0x9f   :  { %2088 = vmatprep.subr.bf16.mxu0 %v2307_v3 }
  0xa2   :  { %2090 = vmatpush3.bf16.msra.mxu0 %v2497_v40  ;;  %v2718_v40 = vsub.f32 %v689_v63, %v736_v34 }
  0xa3   :  { %2091 = vmatprep.subr.bf16.mxu0 %v2307_v3 }
  0xa5   :  { %1724 = vmatmul.mubr.f32.vlgmr.msra.gmra.mrb[0].mxu0 %v2397_v31 }
  0xa6   :  { %2093 = vmatpush3.bf16.msra.mxu0 %v2355_v12  ;;  %1758 = vmatprep.mubr.msk.f32.mxu0 %vm2308_vm0, %v2309_v8  ;;  %v684_v12 = vld [vmem:[%s2918_s2 + $0x50] sm:$0xff] }
  0xa7   :  { %2094 = vmatprep.subr.bf16.mxu0 %v2307_v3 }
  0xaa   :  { %2096 = vmatpush3.bf16.msra.mxu0 %v2358_v13  ;;  %v685_v13 = vld [vmem:[%s2918_s2 + $0x58] sm:$0xff] }
  0xab   :  { %2097 = vmatprep.subr.bf16.mxu0 %v2307_v3 }
  0xae   :  { %2099 = vmatpush3.bf16.msra.mxu0 %v2368_v18  ;;  %v721_v18 = vand.u32 4294901760, %v684_v12 }
  0xaf   :  { %2100 = vmatprep.subr.bf16.mxu0 %v2307_v3 }
  0xb2   :  { %2102 = vmatpush3.bf16.msra.mxu0 %v2387_v26  ;;  %v724_v26 = vand.u32 4294901760, %v685_v13 }
  0xb3   :  { %2103 = vmatprep.subr.bf16.mxu0 %v2307_v3 }
  0xb4   :  { %v2704_v1 = vsub.f32 %v685_v13, %v724_v26  ;;  %v835_v13 = vand.u32 4294901760, %v834_v58 }
  0xb6   :  { %2105 = vmatpush3.bf16.msra.mxu0 %v2414_v38  ;;  %v2684_v38 = vpack.c.bf16 %v724_v26, %v721_v18  ;;  %v847_v26 = vand.u32 4294901760, %v2588_v27 }
  0xb7   :  { %2106 = vmatprep.subr.bf16.mxu0 %v2307_v3 }
  0xb8   :  { %2132 = vmatpush3.bf16.msra.mxu1 %v2684_v38 }
  0xb9   :  { %2133 = vmatprep.subr.bf16.mxu1 %v2307_v3 }
  0xba   :  { %2108 = vmatpush3.bf16.msra.mxu0 %v2439_v55  ;;  %v727_v55 = vand.u32 4294901760, %v686_v45 }
  0xbb   :  { %2109 = vmatprep.subr.bf16.mxu0 %v2307_v3 }
  0xbc   :  { %v2707_v2 = vsub.f32 %v686_v45, %v727_v55 }
  0xbe   :  { %2111 = vmatpush3.bf16.msra.mxu0 %v2451_v62  ;;  %v688_v62 = vld [vmem:[%s2918_s2 + $0x70] sm:$0xff]  ;;  %v868_v42 = vand.u32 4294901760, %v2707_v2 }
  0xbf   :  { %2112 = vmatprep.subr.bf16.mxu0 %v2307_v3  ;;  %v733_v30 = vand.u32 4294901760, %v688_v62 }
  0xc0   :  { %v869_v46 = vsub.f32 %v2707_v2, %v868_v42 }
  0xc1   :  { %v2714_v37 = vpack.c.bf16 %v736_v34, %v733_v30  ;;  %v2716_v39 = vsub.f32 %v688_v62, %v733_v30  ;;  %v861_v30 = vand.u32 4294901760, %v2704_v1 }
  0xc2   :  { %2114 = vmatpush3.bf16.msra.mxu0 %v2455_v0  ;;  %v2702_v0 = vsub.f32 %v684_v12, %v721_v18  ;;  %v828_v12 = vand.u32 4294901760, %v827_v54  ;;  %v840_v18 = vand.u32 4294901760, %v2586_v14  ;;  %v870_v5 = vand.u32 4294901760, %v869_v46 }
  0xc3   :  { %v862_v7 = vsub.f32 %v2704_v1, %v861_v30  ;;  %v2922_v28 = vand.u32 4294901760, %v2716_v39  ;;  %v2921_v54 = vand.u32 4294901760, %v2718_v40 }
  0xc4   :  { %v2149_v45 = vpack.c.bf16 %v835_v13, %v828_v12  ;;  %v854_v63 = vand.u32 4294901760, %v2702_v0  ;;  %v2179_v46 = vpack.c.bf16 %v2704_v1, %v2702_v0 }
  0xc5   :  { %1759 = vmatmul.mubr.f32.vlgmr.msra.gmra.mrb[0].mxu0 %v2397_v31  ;;  %v687_v31 = vld [vmem:[%s2918_s2 + $0x68] sm:$0xff]  ;;  %v863_v33 = vand.u32 4294901760, %v862_v7  ;;  %v883_v12 = vsub.f32 %v2716_v39, %v2922_v28  ;;  %v890_v13 = vsub.f32 %v2718_v40, %v2921_v54  ;;  %v2170_v7 = vpack.c.bf16 %v2578_v20, %v2575_v19  ;;  %s2310_s2 = smov [#allocation2]  }
  0xc6   :  { %v730_v59 = vand.u32 4294901760, %v687_v31  ;;  %v855_v6 = vsub.f32 %v2702_v0, %v854_v63  ;;  %s1339_s20 = sshll.u32 %s2310_s2, 4  ;;  %s1340_s20 = int_to_ptr.vmem [resolvable:$true] %s1339_s20 }
  0xc7   :  { %s2283_s21 = scalar_lea.vmem %s1340_s20, 16  ;;  %s2287_s22 = scalar_lea.vmem %s1340_s20, 32 }
  0xc8   :  { %v2694_v60 = vpack.c.bf16 %v730_v59, %v727_v55  ;;  %v2709_v29 = vsub.f32 %v687_v31, %v730_v59  ;;  %v841_v31 = vsub.f32 %v2586_v14, %v840_v18  ;;  %v848_v55 = vsub.f32 %v2588_v27, %v847_v26  ;;  %p2284_p0 = scmp.ne.s32.totalorder %s1340_s20, %s2283_s21  ;;  %p2288_p1 = scmp.lt.s32.totalorder %s1340_s20, %s1340_s20 }
  0xc9   :  { %v856_v9 = vand.u32 4294901760, %v855_v6  ;;  %v2167_v6 = vpack.c.bf16 %v2573_v56, %v2564_v48  ;;  %v2224_v48 = vpack.c.bf16 %v847_v26, %v840_v18  ;;  %v2227_v56 = vpack.c.bf16 %v861_v30, %v854_v63  ;;  %p2289_p2 = scmp.lt.s32.totalorder %s2287_s22, %s2283_s21 }
  0xca   :  { %2135 = vmatpush3.bf16.msra.mxu1 %v2694_v60  ;;  %v842_v59 = vand.u32 4294901760, %v841_v31  ;;  %v849_v62 = vand.u32 4294901760, %v848_v55  ;;  %v2923_v32 = vand.u32 4294901760, %v2709_v29  ;;  %v884_v31 = vand.u32 4294901760, %v883_v12 }
  0xcb   :  { %2136 = vmatprep.subr.bf16.mxu1 %v2307_v3  ;;  %v2155_v15 = vpack.c.bf16 %v863_v33, %v856_v9  ;;  %v891_v55 = vand.u32 4294901760, %v890_v13  ;;  %v2173_v9 = vpack.c.bf16 %v2584_v44, %v2582_v43  ;;  %v2176_v33 = vpack.c.bf16 %v2588_v27, %v2586_v14  ;;  %p2290_p3 = por %p2289_p2, %p2288_p1 }
  0xcc   :  { %v2152_v34 = vpack.c.bf16 %v849_v62, %v842_v59  ;;  %v876_v57 = vsub.f32 %v2709_v29, %v2923_v32  ;;  %v2164_v62 = vpack.c.bf16 %v2562_v47, %v2560_v61  ;;  %v2218_v61 = vpack.c.bf16 %v819_v49, %v812_v17 }
  0xcd   :  { %v2161_v59 = vpack.c.bf16 %v891_v55, %v884_v31  ;;  %v2221_v47 = vpack.c.bf16 %v833_v50, %v826_v24  ;;  %v2925_v19 = vand.u32 4294901760, %v2709_v29  ;;  %v2926_v43 = vand.u32 4294901760, %v2716_v39  ;;  %p2291_p4 = pnand %p2290_p3, %p2284_p0 }
  0xce   :  { %2138 = vmatpush3.bf16.msra.mxu1 %v2714_v37  ;;  %v877_v22 = vand.u32 4294901760, %v876_v57  ;;  %v2182_v57 = vpack.c.bf16 %v2709_v29, %v2707_v2  ;;  %v2927_v44 = vand.u32 4294901760, %v2718_v40 }
  0xcf   :  { %2139 = vmatprep.subr.bf16.mxu1 %v2307_v3  ;;  %v2230_v20 = vpack.c.bf16 %v2925_v19, %v868_v42 }
  0xd0   :  { %v2158_v58 = vpack.c.bf16 %v877_v22, %v870_v5  ;;  %v2185_v5 = vpack.c.bf16 %v2718_v40, %v2716_v39  ;;  %v2233_v14 = vpack.c.bf16 %v2927_v44, %v2926_v43 }
 0x198   :  { %v669_v22 = vpop.f32.mrb[0].mxu0 }
 0x199   :  { %v673_v12 = vmul.f32 %v669_v22, %v2380_v23  ;;  %v1760_v13 = vpop.f32.mrb[1].mxu0  ;;  %v2212_v23 = vpack.c.bf16 %v791_v36, %v784_v35 }
 0x19b   :  { %v2801_v31 = vand.u32 4294901760, %v673_v12 }
 0x19d   :  { %v772_v55 = vsub.f32 %v673_v12, %v2801_v31 }
 0x19f   :  { %v773_v54 = vand.u32 4294901760, %v772_v55 }
 0x1a1   :  { %v774_v28 = vsub.f32 %v772_v55, %v773_v54 }
 0x1a3   :  { %v775_v32 = vand.u32 4294901760, %v774_v28 }
 0x1a5   :  { %1794 = vmatmul.mubr.f32.vlgmr.msra.gmra.mrb[0].mxu1 %v775_v32 }
 0x1a6   :  { %2141 = vmatpush3.bf16.msra.mxu1 %v2140_v41  ;;  %1828 = vmatprep.mubr.msk.f32.mxu1 %vm2308_vm0, %v2309_v8  ;;  %v2215_v41 = vpack.c.bf16 %v805_v11, %v798_v10 }
 0x1a7   :  { %2142 = vmatprep.subr.bf16.mxu1 %v2307_v3 }
 0x1aa   :  { %2144 = vmatpush3.bf16.msra.mxu1 %v2143_v21 }
 0x1ab   :  { %2145 = vmatprep.subr.bf16.mxu1 %v2307_v3 }
 0x1ae   :  { %2147 = vmatpush3.bf16.msra.mxu1 %v2146_v52 }
 0x1af   :  { %2148 = vmatprep.subr.bf16.mxu1 %v2307_v3 }
 0x1b2   :  { %2150 = vmatpush3.bf16.msra.mxu1 %v2149_v45 }
 0x1b3   :  { %2151 = vmatprep.subr.bf16.mxu1 %v2307_v3 }
 0x1b6   :  { %2153 = vmatpush3.bf16.msra.mxu1 %v2152_v34 }
 0x1b7   :  { %2154 = vmatprep.subr.bf16.mxu1 %v2307_v3 }
 0x1ba   :  { %2156 = vmatpush3.bf16.msra.mxu1 %v2155_v15 }
 0x1bb   :  { %2157 = vmatprep.subr.bf16.mxu1 %v2307_v3 }
 0x1be   :  { %2159 = vmatpush3.bf16.msra.mxu1 %v2158_v58 }
 0x1bf   :  { %2160 = vmatprep.subr.bf16.mxu1 %v2307_v3 }
 0x1c2   :  { %2162 = vmatpush3.bf16.msra.mxu1 %v2161_v59 }
 0x1c3   :  { %2163 = vmatprep.subr.bf16.mxu1 %v2307_v3 }
 0x1c5   :  { %1829 = vmatmul.mubr.f32.vlgmr.msra.gmra.mrb[0].mxu1 %v2801_v31 }
 0x1c6   :  { %2165 = vmatpush3.bf16.msra.mxu1 %v2164_v62  ;;  %1863 = vmatprep.mubr.msk.f32.mxu1 %vm2308_vm0, %v2309_v8 }
 0x1c7   :  { %2166 = vmatprep.subr.bf16.mxu1 %v2307_v3 }
 0x1ca   :  { %2168 = vmatpush3.bf16.msra.mxu1 %v2167_v6 }
 0x1cb   :  { %2169 = vmatprep.subr.bf16.mxu1 %v2307_v3 }
 0x1ce   :  { %2171 = vmatpush3.bf16.msra.mxu1 %v2170_v7 }
 0x1cf   :  { %2172 = vmatprep.subr.bf16.mxu1 %v2307_v3 }
 0x1d2   :  { %2174 = vmatpush3.bf16.msra.mxu1 %v2173_v9 }
 0x1d3   :  { %2175 = vmatprep.subr.bf16.mxu1 %v2307_v3 }
 0x1d6   :  { %2177 = vmatpush3.bf16.msra.mxu1 %v2176_v33 }
 0x1d7   :  { %2178 = vmatprep.subr.bf16.mxu1 %v2307_v3 }
 0x1da   :  { %2180 = vmatpush3.bf16.msra.mxu1 %v2179_v46 }
 0x1db   :  { %2181 = vmatprep.subr.bf16.mxu1 %v2307_v3 }
 0x1de   :  { %2183 = vmatpush3.bf16.msra.mxu1 %v2182_v57 }
 0x1df   :  { %2184 = vmatprep.subr.bf16.mxu1 %v2307_v3 }
 0x1e2   :  { %2186 = vmatpush3.bf16.msra.mxu1 %v2185_v5 }
 0x1e3   :  { %2187 = vmatprep.subr.bf16.mxu1 %v2307_v3 }
 0x1e5   :  { %1864 = vmatmul.mubr.f32.vlgmr.msra.gmra.mrb[0].mxu1 %v772_v55 }
 0x1e6   :  { %2189 = vmatpush3.bf16.msra.mxu1 %v2558_v16  ;;  %1898 = vmatprep.mubr.msk.f32.mxu1 %vm2308_vm0, %v2309_v8 }
 0x1e7   :  { %2190 = vmatprep.subr.bf16.mxu1 %v2307_v3 }
 0x1ea   :  { %2192 = vmatpush3.bf16.msra.mxu1 %v2571_v53 }
 0x1eb   :  { %2193 = vmatprep.subr.bf16.mxu1 %v2307_v3 }
 0x1ee   :  { %2195 = vmatpush3.bf16.msra.mxu1 %v2593_v4 }
 0x1ef   :  { %2196 = vmatprep.subr.bf16.mxu1 %v2307_v3 }
 0x1f2   :  { %2198 = vmatpush3.bf16.msra.mxu1 %v2600_v25 }
 0x1f3   :  { %2199 = vmatprep.subr.bf16.mxu1 %v2307_v3 }
 0x1f6   :  { %2201 = vmatpush3.bf16.msra.mxu1 %v2607_v51 }
 0x1f7   :  { %2202 = vmatprep.subr.bf16.mxu1 %v2307_v3 }
 0x1fa   :  { %2204 = vmatpush3.bf16.msra.mxu1 %v2684_v38 }
 0x1fb   :  { %2205 = vmatprep.subr.bf16.mxu1 %v2307_v3 }
 0x1fe   :  { %2207 = vmatpush3.bf16.msra.mxu1 %v2694_v60 }
 0x1ff   :  { %2208 = vmatprep.subr.bf16.mxu1 %v2307_v3 }
 0x202   :  { %2210 = vmatpush3.bf16.msra.mxu1 %v2714_v37 }
 0x203   :  { %2211 = vmatprep.subr.bf16.mxu1 %v2307_v3 }
 0x205   :  { %1899 = vmatmul.mubr.f32.vlgmr.msra.gmra.mrb[0].mxu1 %v773_v54 }
 0x206   :  { %2213 = vmatpush3.bf16.msra.mxu1 %v2212_v23  ;;  %1933 = vmatprep.mubr.msk.f32.mxu1 %vm2308_vm0, %v2309_v8 }
 0x207   :  { %2214 = vmatprep.subr.bf16.mxu1 %v2307_v3 }
 0x20a   :  { %2216 = vmatpush3.bf16.msra.mxu1 %v2215_v41 }
 0x20b   :  { %2217 = vmatprep.subr.bf16.mxu1 %v2307_v3 }
 0x20e   :  { %2219 = vmatpush3.bf16.msra.mxu1 %v2218_v61 }
 0x20f   :  { %2220 = vmatprep.subr.bf16.mxu1 %v2307_v3 }
 0x212   :  { %2222 = vmatpush3.bf16.msra.mxu1 %v2221_v47 }
 0x213   :  { %2223 = vmatprep.subr.bf16.mxu1 %v2307_v3 }
 0x216   :  { %2225 = vmatpush3.bf16.msra.mxu1 %v2224_v48 }
 0x217   :  { %2226 = vmatprep.subr.bf16.mxu1 %v2307_v3 }
 0x21a   :  { %2228 = vmatpush3.bf16.msra.mxu1 %v2227_v56 }
 0x21b   :  { %2229 = vmatprep.subr.bf16.mxu1 %v2307_v3 }
 0x21e   :  { %2231 = vmatpush3.bf16.msra.mxu1 %v2230_v20 }
 0x21f   :  { %2232 = vmatprep.subr.bf16.mxu1 %v2307_v3 }
 0x222   :  { %2234 = vmatpush3.bf16.msra.mxu1 %v2233_v14 }
 0x223   :  { %2235 = vmatprep.subr.bf16.mxu1 %v2307_v3 }
 0x225   :  { %1934 = vmatmul.mubr.f32.vlgmr.msra.gmra.mrb[0].mxu1 %v2801_v31 }
 0x226   :  { %2237 = vmatpush3.bf16.msra.mxu1 %v2558_v16  ;;  %1968 = vmatprep.mubr.msk.f32.mxu1 %vm2308_vm0, %v2309_v8 }
 0x227   :  { %2238 = vmatprep.subr.bf16.mxu1 %v2307_v3 }
 0x22a   :  { %2240 = vmatpush3.bf16.msra.mxu1 %v2571_v53 }
 0x22b   :  { %2241 = vmatprep.subr.bf16.mxu1 %v2307_v3 }
 0x22e   :  { %2243 = vmatpush3.bf16.msra.mxu1 %v2593_v4 }
 0x22f   :  { %2244 = vmatprep.subr.bf16.mxu1 %v2307_v3 }
 0x232   :  { %2246 = vmatpush3.bf16.msra.mxu1 %v2600_v25 }
 0x233   :  { %2247 = vmatprep.subr.bf16.mxu1 %v2307_v3 }
 0x236   :  { %2249 = vmatpush3.bf16.msra.mxu1 %v2607_v51 }
 0x237   :  { %2250 = vmatprep.subr.bf16.mxu1 %v2307_v3 }
 0x23a   :  { %2252 = vmatpush3.bf16.msra.mxu1 %v2684_v38 }
 0x23b   :  { %2253 = vmatprep.subr.bf16.mxu1 %v2307_v3 }
 0x23e   :  { %2255 = vmatpush3.bf16.msra.mxu1 %v2694_v60 }
 0x23f   :  { %2256 = vmatprep.subr.bf16.mxu1 %v2307_v3 }
 0x242   :  { %2258 = vmatpush3.bf16.msra.mxu1 %v2714_v37 }
 0x245   :  { %1969 = vmatmul.mubr.f32.vlgmr.msra.gmra.mrb[0].mxu1 %v2801_v31 }
 0x318   :  { %v1327_v8 = vpop.f32.mrb[0].mxu1 }
 0x319   :  { %1332 = vst.msk [vmem:[#allocation2] sm:$0x1] %vm1331_vm1, %v1327_v8  ;;  %v1970_v16 = vpop.f32.mrb[1].mxu1 }
 0x31a   :  { %2294 = shalt.err (!%p2291_p4)
}
 0x31b   :  { %s2295_s25 = scalar_lea.hbm %s2919_s3, 16 }
 0x31c   :  { %p2296_p5 = scmp.ne.s32.totalorder %s2919_s3, %s2295_s25  ;;  %p2299_p6 = scmp.lt.u32.totalorder %s2295_s25, %s2919_s3 }
 0x31e   :  { %p2301_p7 = pnand %p2299_p6, %p2296_p5 }
 0x320   :  { %2304 = shalt.err (!%p2301_p7)
}
 0x321   :  { %1342 = dma.vmem_to_hbm [thread:$0]  %s1340_s20, 16, %s2919_s3, [#allocation3]  }
 0x322   :  { %2305 = dma.done.wait [#allocation3], 16  }
 0x323   :  { %2306 = vsyncadd [#allocation3], 4294967280 }
 0x324   :  { %1346 = vsyncpa [#allocation3], 1 }

</bundles_post_ra>
